<compile_context>
chip_gen: v6e
topology: v6e:2x2x1
jax: 0.10.0
libtpu: 0.0.40
codegen_flags: <defaults>
</compile_context>

<pallas_src>
import functools

import jax
import jax.numpy as jnp
from jax.experimental import pallas as pl
from jax.experimental.pallas import tpu as pltpu

# Module-level dims (synthetic, small, consistent with the MAG forward).
TEXT_DIM = 32
VISUAL_DIM = 16
ACOUSTIC_DIM = 16
HIDDEN_SIZE = TEXT_DIM      # LayerNorm(hidden_size) must match text embedding dim
LN_EPS = 1e-5               # torch.nn.LayerNorm default eps
MAG_EPS = 1e-6              # eps used inside MAG.forward

_CAT_DIM = TEXT_DIM + VISUAL_DIM + ACOUSTIC_DIM   # 64
_FUSED_COLS = 4 * TEXT_DIM                        # 128


def _mag_kernel(beta_ref,       # (1,) beta_shift scalar in SMEM
                xcat_ref,       # (blk, 64)  [text | visual | acoustic]
                wbig_ref,       # (64, 128)  packed fused weight
                vec_ref,        # (3, 128)   [b_big ; gamma(pad) ; beta(pad)]
                out_ref):       # (blk, 32)
    Dt = out_ref.shape[-1]

    x_cat = xcat_ref[...]
    text = x_cat[:, :Dt].astype(jnp.float32)

    # Single fused MXU matmul: lanes = [wv_logits | wa_logits | h_v | h_a].
    fused = jnp.dot(x_cat, wbig_ref[...], preferred_element_type=jnp.float32)
    fused = fused + vec_ref[0:1, :].astype(jnp.float32)

    weight_v = jnp.maximum(fused[:, 0 * Dt:1 * Dt], 0.0)   # relu(W_hv(cat(v,t)))
    weight_a = jnp.maximum(fused[:, 1 * Dt:2 * Dt], 0.0)   # relu(W_ha(cat(a,t)))
    h_v = fused[:, 2 * Dt:3 * Dt]                          # W_v(visual)
    h_a = fused[:, 3 * Dt:4 * Dt]                          # W_a(acoustic)
    h_m = weight_v * h_v + weight_a * h_a

    # Per-row L2 norms and the adaptation gate alpha.
    em_norm = jnp.sqrt(jnp.sum(text * text, axis=-1, keepdims=True))
    hm_norm = jnp.sqrt(jnp.sum(h_m * h_m, axis=-1, keepdims=True))
    hm_norm = jnp.where(hm_norm == 0.0, 1.0, hm_norm)
    denom = hm_norm + MAG_EPS
    # EUP reciprocal + one Newton-Raphson step (keeps full f32 accuracy).
    r = pl.reciprocal(denom, approx=True)
    r = r * (2.0 - denom * r)
    alpha = jnp.minimum(em_norm * r * beta_ref[0], 1.0)    # (blk, 1)

    x = alpha * h_m + text                                 # acoustic_vis_embedding + text

    # LayerNorm over the feature axis.
    mean = jnp.mean(x, axis=-1, keepdims=True)
    var = jnp.mean((x - mean) * (x - mean), axis=-1, keepdims=True)
    gamma = vec_ref[1:2, :Dt].astype(jnp.float32)
    beta_ln = vec_ref[2:3, :Dt].astype(jnp.float32)
    y = (x - mean) * jax.lax.rsqrt(var + LN_EPS) * gamma + beta_ln

    # Dropout: identity at inference time.
    out_ref[...] = y.astype(out_ref.dtype)


def _round_up(x, m):
    return (x + m - 1) // m * m


def _pick_block_rows(n_rows, requested):
    """Pick the row-tile size: as large as requested (capped), but keep >= 4
    grid steps when n_rows allows so the 'parallel' axis load-balances across
    the 2 TensorCores on v7x, and cap the absolute size for VMEM safety."""
    requested = int(min(max(requested, 8), 4096))
    blk = max(8, min(requested, _round_up(n_rows, 8)))
    if n_rows >= 4 * 8:
        blk = min(blk, max(8, _round_up(max(n_rows // 4, 1), 8)))
    return _round_up(blk, 8)


@functools.partial(jax.jit, static_argnames=("block_rows",))
def mag_forward(text_embedding, visual, acoustic, params, *, block_rows=2048):
    """text_embedding: (B, S, TEXT_DIM); visual: (B, S, VISUAL_DIM);
       acoustic: (B, S, ACOUSTIC_DIM).  Returns (B, S, TEXT_DIM)."""
    B, S, Dt = text_embedding.shape
    Dv = visual.shape[-1]
    Da = acoustic.shape[-1]
    Dcat = Dt + Dv + Da
    N = B * S
    dtype = text_embedding.dtype

    blk = _pick_block_rows(N, block_rows)
    N_pad = _round_up(N, blk)

    # Single lane-dense activation stream: [text | visual | acoustic].
    x_cat = jnp.concatenate(
        [text_embedding.reshape(N, Dt),
         visual.reshape(N, Dv).astype(dtype),
         acoustic.reshape(N, Da).astype(dtype)], axis=-1)
    if N_pad != N:
        x_cat = jnp.pad(x_cat, ((0, N_pad - N), (0, 0)))

    # Pack the six matmuls into one (Dcat, 4*Dt) weight. Row blocks follow the
    # x_cat layout (text, visual, acoustic); column blocks are
    # [W_hv logits | W_ha logits | h_v | h_a]; unused blocks are zero.
    z_v = jnp.zeros((Dv, Dt), jnp.float32)
    z_a = jnp.zeros((Da, Dt), jnp.float32)
    z_t = jnp.zeros((Dt, Dt), jnp.float32)
    w_big = jnp.concatenate([
        jnp.concatenate([params["W_hv_t"], params["W_ha_t"], z_t, z_t], axis=1),
        jnp.concatenate([params["W_hv_v"], z_v, params["W_v"], z_v], axis=1),
        jnp.concatenate([z_a, params["W_ha_a"], z_a, params["W_a"]], axis=1),
    ], axis=0).astype(dtype)                                    # (Dcat, 4*Dt)

    # Pack all small per-output vectors into one tile:
    #   row 0: [b_hv | b_ha | b_v | b_a]   row 1: gamma (padded)  row 2: beta (padded)
    b_big = jnp.concatenate([params["b_hv"], params["b_ha"],
                             params["b_v"], params["b_a"]], axis=-1)
    pad_cols = 4 * Dt - Dt
    gamma_row = jnp.pad(params["ln_gamma"], ((0, 0), (0, pad_cols)))
    beta_row = jnp.pad(params["ln_beta"], ((0, 0), (0, pad_cols)))
    vec = jnp.concatenate([b_big, gamma_row, beta_row], axis=0).astype(jnp.float32)

    grid = N_pad // blk

    out_pad = pl.pallas_call(
        _mag_kernel,
        out_shape=jax.ShapeDtypeStruct((N_pad, Dt), dtype),
        grid=(grid,),
        in_specs=[
            pl.BlockSpec(memory_space=pltpu.MemorySpace.SMEM),       # beta_shift scalar
            pl.BlockSpec((blk, Dcat), lambda i: (i, 0)),             # fused activations
            pl.BlockSpec((Dcat, 4 * Dt), lambda i: (0, 0)),          # packed weight
            pl.BlockSpec((3, 4 * Dt), lambda i: (0, 0)),             # packed bias/LN params
        ],
        out_specs=pl.BlockSpec((blk, Dt), lambda i: (i, 0)),
        compiler_params=pltpu.CompilerParams(
            dimension_semantics=("parallel",),
            vmem_limit_bytes=32 * 1024 * 1024,
        ),
    )(
        params["beta_shift"], x_cat, w_big, vec,
    )
    return out_pad[:N].reshape(B, S, Dt)


def mag_reference(text_embedding, visual, acoustic, params):
    """Pure-JAX reference mirroring the PyTorch forward (eval mode)."""
    f32 = jnp.float32
    text = text_embedding.astype(f32)
    vis = visual.astype(f32)
    acc = acoustic.astype(f32)
    weight_v = jax.nn.relu(vis @ params["W_hv_v"] + text @ params["W_hv_t"]
                           + params["b_hv"])
    weight_a = jax.nn.relu(acc @ params["W_ha_a"] + text @ params["W_ha_t"]
                           + params["b_ha"])
    h_m = weight_v * (vis @ params["W_v"] + params["b_v"]) \
        + weight_a * (acc @ params["W_a"] + params["b_a"])
    em_norm = jnp.linalg.norm(text, axis=-1)
    hm_norm = jnp.linalg.norm(h_m, axis=-1)
    hm_norm = jnp.where(hm_norm == 0.0, 1.0, hm_norm)
    thresh = em_norm / (hm_norm + MAG_EPS) * params["beta_shift"][0]
    alpha = jnp.minimum(thresh, 1.0)[..., None]
    x = alpha * h_m + text
    mean = jnp.mean(x, axis=-1, keepdims=True)
    var = jnp.mean((x - mean) ** 2, axis=-1, keepdims=True)
    y = (x - mean) / jnp.sqrt(var + LN_EPS) * params["ln_gamma"][0] \
        + params["ln_beta"][0]
    return y.astype(text_embedding.dtype)


def init_params(key, beta_shift=0.5):
    ks = jax.random.split(key, 8)
    scale = 0.05
    p = {
        # W_hv acts on cat(visual, text): split into visual and text parts.
        "W_hv_v": scale * jax.random.normal(ks[0], (VISUAL_DIM, TEXT_DIM), jnp.float32),
        "W_hv_t": scale * jax.random.normal(ks[1], (TEXT_DIM, TEXT_DIM), jnp.float32),
        "b_hv": scale * jax.random.normal(ks[2], (1, TEXT_DIM), jnp.float32),
        # W_ha acts on cat(acoustic, text).
        "W_ha_a": scale * jax.random.normal(ks[3], (ACOUSTIC_DIM, TEXT_DIM), jnp.float32),
        "W_ha_t": scale * jax.random.normal(ks[4], (TEXT_DIM, TEXT_DIM), jnp.float32),
        "b_ha": scale * jax.random.normal(ks[5], (1, TEXT_DIM), jnp.float32),
        "W_v": scale * jax.random.normal(ks[6], (VISUAL_DIM, TEXT_DIM), jnp.float32),
        "b_v": jnp.zeros((1, TEXT_DIM), jnp.float32),
        "W_a": scale * jax.random.normal(ks[7], (ACOUSTIC_DIM, TEXT_DIM), jnp.float32),
        "b_a": jnp.zeros((1, TEXT_DIM), jnp.float32),
        "ln_gamma": jnp.ones((1, TEXT_DIM), jnp.float32),
        "ln_beta": jnp.zeros((1, TEXT_DIM), jnp.float32),
        "beta_shift": jnp.array([beta_shift], jnp.float32),
    }
    return p


if __name__ == "__main__":
    B, S = 2, 8
    key = jax.random.PRNGKey(0)
    k_t, k_v, k_a, k_p = jax.random.split(key, 4)

    text_embedding = jax.random.normal(k_t, (B, S, TEXT_DIM), jnp.float32)
    visual = jax.random.normal(k_v, (B, S, VISUAL_DIM), jnp.float32)
    acoustic = jax.random.normal(k_a, (B, S, ACOUSTIC_DIM), jnp.float32)
    params = init_params(k_p, beta_shift=0.5)

    out = mag_forward(text_embedding, visual, acoustic, params, block_rows=2048)
    out = jax.block_until_ready(out)

    ref = mag_reference(text_embedding, visual, acoustic, params)
    assert out.shape == (B, S, TEXT_DIM)
    assert jnp.allclose(out, ref, atol=1e-4, rtol=1e-4), \
        f"max err {jnp.max(jnp.abs(out - ref))}"

    print("KERNEL_OK")
</pallas_src>

<mosaic_0001>
module attributes {stable_mosaic.version = 11 : i64} {
  func.func @_mag_kernel(%arg0: i32, %arg1: memref<1xf32, #tpu.memory_space<smem>>, %arg2: memref<16x64xf32, #tpu.memory_space<vmem>>, %arg3: memref<64x128xf32, #tpu.memory_space<vmem>>, %arg4: memref<3x128xf32, #tpu.memory_space<vmem>>, %arg5: memref<16x32xf32, #tpu.memory_space<vmem>>) attributes {dimension_semantics = [#tpu.dimension_semantics<parallel>], iteration_bounds = array<i64: 1>, scalar_prefetch = 0 : i64, scratch_operands = 0 : i64, tpu.core_type = #tpu.core_type<tc>, window_params = [{transform_indices = @transform_0, window_bounds = array<i64: 1>}, {transform_indices = @transform_1, window_bounds = array<i64: 16, 64>}, {pipeline_mode = #tpu.pipeline_mode<synchronous>, transform_indices = @transform_2, window_bounds = array<i64: 64, 128>}, {pipeline_mode = #tpu.pipeline_mode<synchronous>, transform_indices = @transform_3, window_bounds = array<i64: 3, 128>}, {transform_indices = @transform_4, window_bounds = array<i64: 16, 32>}]} {
    %c0 = arith.constant 0 : index
    %c0_0 = arith.constant 0 : index
    %0 = vector.load %arg2[%c0, %c0_0] : memref<16x64xf32, #tpu.memory_space<vmem>>, vector<16x64xf32>
    %1 = vector.extract_strided_slice %0 {offsets = [0, 0], sizes = [16, 32], strides = [1, 1]} : vector<16x64xf32> to vector<16x32xf32>
    %c0_1 = arith.constant 0 : index
    %c0_2 = arith.constant 0 : index
    %2 = vector.load %arg3[%c0_1, %c0_2] : memref<64x128xf32, #tpu.memory_space<vmem>>, vector<64x128xf32>
    %cst = arith.constant dense<0.000000e+00> : vector<16x128xf32>
    %3 = tpu.matmul %0, %2, %cst {dimension_numbers = #tpu.dot_dimension_numbers<[1], [0], [0], [1], [0, 0, 1, 1], [], []>} : vector<16x64xf32>, vector<64x128xf32>, vector<16x128xf32> -> vector<16x128xf32>
    %c0_3 = arith.constant 0 : index
    %c0_4 = arith.constant 0 : index
    %4 = vector.load %arg4[%c0_3, %c0_4] : memref<3x128xf32, #tpu.memory_space<vmem>>, vector<1x128xf32>
    %5 = vector.broadcast %4 : vector<1x128xf32> to vector<16x128xf32>
    %6 = arith.addf %3, %5 : vector<16x128xf32>
    %7 = vector.extract_strided_slice %6 {offsets = [0, 0], sizes = [16, 32], strides = [1, 1]} : vector<16x128xf32> to vector<16x32xf32>
    %cst_5 = arith.constant 0.000000e+00 : f32
    %8 = vector.broadcast %cst_5 : f32 to vector<16x32xf32>
    %9 = arith.maximumf %7, %8 : vector<16x32xf32>
    %10 = vector.extract_strided_slice %6 {offsets = [0, 32], sizes = [16, 32], strides = [1, 1]} : vector<16x128xf32> to vector<16x32xf32>
    %cst_6 = arith.constant 0.000000e+00 : f32
    %11 = vector.broadcast %cst_6 : f32 to vector<16x32xf32>
    %12 = arith.maximumf %10, %11 : vector<16x32xf32>
    %13 = vector.extract_strided_slice %6 {offsets = [0, 64], sizes = [16, 32], strides = [1, 1]} : vector<16x128xf32> to vector<16x32xf32>
    %14 = vector.extract_strided_slice %6 {offsets = [0, 96], sizes = [16, 32], strides = [1, 1]} : vector<16x128xf32> to vector<16x32xf32>
    %15 = arith.mulf %9, %13 : vector<16x32xf32>
    %16 = arith.mulf %12, %14 : vector<16x32xf32>
    %17 = arith.addf %15, %16 : vector<16x32xf32>
    %18 = arith.mulf %1, %1 : vector<16x32xf32>
    %cst_7 = arith.constant dense<0.000000e+00> : vector<16xf32>
    %19 = vector.multi_reduction <add>, %18, %cst_7 [1] : vector<16x32xf32> to vector<16xf32>
    %20 = vector.shape_cast %19 : vector<16xf32> to vector<16x1xf32>
    %21 = math.sqrt %20 : vector<16x1xf32>
    %22 = arith.mulf %17, %17 : vector<16x32xf32>
    %cst_8 = arith.constant dense<0.000000e+00> : vector<16xf32>
    %23 = vector.multi_reduction <add>, %22, %cst_8 [1] : vector<16x32xf32> to vector<16xf32>
    %24 = vector.shape_cast %23 : vector<16xf32> to vector<16x1xf32>
    %25 = math.sqrt %24 : vector<16x1xf32>
    %cst_9 = arith.constant 0.000000e+00 : f32
    %26 = vector.broadcast %cst_9 : f32 to vector<16x1xf32>
    %27 = arith.cmpf oeq, %25, %26 : vector<16x1xf32>
    %cst_10 = arith.constant 1.000000e+00 : f32
    %28 = vector.broadcast %cst_10 : f32 to vector<16x1xf32>
    %29 = arith.select %27, %28, %25 : vector<16x1xi1>, vector<16x1xf32>
    %cst_11 = arith.constant 9.99999997E-7 : f32
    %30 = vector.broadcast %cst_11 : f32 to vector<16x1xf32>
    %31 = arith.addf %29, %30 : vector<16x1xf32>
    %32 = tpu.reciprocal %31 {approx = true} : vector<16x1xf32> -> vector<16x1xf32>
    %33 = arith.mulf %31, %32 : vector<16x1xf32>
    %cst_12 = arith.constant 2.000000e+00 : f32
    %34 = vector.broadcast %cst_12 : f32 to vector<16x1xf32>
    %35 = arith.subf %34, %33 : vector<16x1xf32>
    %36 = arith.mulf %32, %35 : vector<16x1xf32>
    %37 = arith.mulf %21, %36 : vector<16x1xf32>
    %c0_13 = arith.constant 0 : index
    %38 = memref.load %arg1[%c0_13] : memref<1xf32, #tpu.memory_space<smem>>
    %39 = vector.broadcast %38 : f32 to vector<16x1xf32>
    %40 = arith.mulf %37, %39 : vector<16x1xf32>
    %cst_14 = arith.constant 1.000000e+00 : f32
    %41 = vector.broadcast %cst_14 : f32 to vector<16x1xf32>
    %42 = arith.minimumf %40, %41 : vector<16x1xf32>
    %43 = vector.broadcast %42 : vector<16x1xf32> to vector<16x32xf32>
    %44 = arith.mulf %43, %17 : vector<16x32xf32>
    %45 = arith.addf %44, %1 : vector<16x32xf32>
    %cst_15 = arith.constant dense<0.000000e+00> : vector<16xf32>
    %46 = vector.multi_reduction <add>, %45, %cst_15 [1] : vector<16x32xf32> to vector<16xf32>
    %47 = vector.shape_cast %46 : vector<16xf32> to vector<16x1xf32>
    %cst_16 = arith.constant 3.200000e+01 : f32
    %48 = vector.broadcast %cst_16 : f32 to vector<16x1xf32>
    %49 = arith.divf %47, %48 : vector<16x1xf32>
    %50 = vector.broadcast %49 : vector<16x1xf32> to vector<16x32xf32>
    %51 = arith.subf %45, %50 : vector<16x32xf32>
    %52 = vector.broadcast %49 : vector<16x1xf32> to vector<16x32xf32>
    %53 = arith.subf %45, %52 : vector<16x32xf32>
    %54 = arith.mulf %51, %53 : vector<16x32xf32>
    %cst_17 = arith.constant dense<0.000000e+00> : vector<16xf32>
    %55 = vector.multi_reduction <add>, %54, %cst_17 [1] : vector<16x32xf32> to vector<16xf32>
    %56 = vector.shape_cast %55 : vector<16xf32> to vector<16x1xf32>
    %cst_18 = arith.constant 3.200000e+01 : f32
    %57 = vector.broadcast %cst_18 : f32 to vector<16x1xf32>
    %58 = arith.divf %56, %57 : vector<16x1xf32>
    %c1 = arith.constant 1 : index
    %c0_19 = arith.constant 0 : index
    %59 = vector.load %arg4[%c1, %c0_19] : memref<3x128xf32, #tpu.memory_space<vmem>>, vector<1x32xf32>
    %c2 = arith.constant 2 : index
    %c0_20 = arith.constant 0 : index
    %60 = vector.load %arg4[%c2, %c0_20] : memref<3x128xf32, #tpu.memory_space<vmem>>, vector<1x32xf32>
    %61 = vector.broadcast %49 : vector<16x1xf32> to vector<16x32xf32>
    %62 = arith.subf %45, %61 : vector<16x32xf32>
    %cst_21 = arith.constant 9.99999974E-6 : f32
    %63 = vector.broadcast %cst_21 : f32 to vector<16x1xf32>
    %64 = arith.addf %58, %63 : vector<16x1xf32>
    %65 = math.rsqrt %64 : vector<16x1xf32>
    %66 = vector.broadcast %65 : vector<16x1xf32> to vector<16x32xf32>
    %67 = arith.mulf %62, %66 : vector<16x32xf32>
    %68 = vector.broadcast %59 : vector<1x32xf32> to vector<16x32xf32>
    %69 = arith.mulf %67, %68 : vector<16x32xf32>
    %70 = vector.broadcast %60 : vector<1x32xf32> to vector<16x32xf32>
    %71 = arith.addf %69, %70 : vector<16x32xf32>
    %c0_22 = arith.constant 0 : index
    %c0_23 = arith.constant 0 : index
    %72 = vector.load %arg5[%c0_22, %c0_23] : memref<16x32xf32, #tpu.memory_space<vmem>>, vector<16x32xf32>
    tpu.vector_store %arg5[%c0_22, %c0_23], %71 {strides = array<i32>} : memref<16x32xf32, #tpu.memory_space<vmem>>, vector<16x32xf32>,
    return
  }
  func.func @transform_0(%arg0: i32) -> i32 {
    %c0_i32 = arith.constant 0 : i32
    %c0_i32_0 = arith.constant 0 : i32
    return %c0_i32 : i32
  }
  func.func @transform_1(%arg0: i32) -> (i32, i32) {
    %c0_i32 = arith.constant 0 : i32
    %c0_i32_0 = arith.constant 0 : i32
    return %arg0, %c0_i32 : i32, i32
  }
  func.func @transform_2(%arg0: i32) -> (i32, i32) {
    %c0_i32 = arith.constant 0 : i32
    %c0_i32_0 = arith.constant 0 : i32
    %c0_i32_1 = arith.constant 0 : i32
    return %c0_i32, %c0_i32_0 : i32, i32
  }
  func.func @transform_3(%arg0: i32) -> (i32, i32) {
    %c0_i32 = arith.constant 0 : i32
    %c0_i32_0 = arith.constant 0 : i32
    %c0_i32_1 = arith.constant 0 : i32
    return %c0_i32, %c0_i32_0 : i32, i32
  }
  func.func @transform_4(%arg0: i32) -> (i32, i32) {
    %c0_i32 = arith.constant 0 : i32
    %c0_i32_0 = arith.constant 0 : i32
    return %arg0, %c0_i32 : i32, i32
  }
}

</mosaic_0001>

<bundles_post_ra>
// kernel: mag_forward.1
= control target key start
LH: loop header
LB: loop body
LE: loop exit
PB: predicated region body
PF: predicated region fallthrough
CT: control target
= control target key end

     0   :  { %vm34_vm0 = vcmask 523264   ;;  %s454_s0 = inlined_call_operand.<no memory space> [shape: f32[1], index: 0, kind: input, shape index: {}]   ;;  %s455_s1 = inlined_call_operand.vmem [shape: f32[16,64], index: 1, kind: input, shape index: {}]   ;;  %s456_s2 = inlined_call_operand.vmem [shape: f32[64,128], index: 2, kind: input, shape index: {}]   ;;  %s457_s3 = inlined_call_operand.vmem [shape: f32[3,128], index: 3, kind: input, shape index: {}]   ;;  %s458_s4 = inlined_call_operand.hbm [shape: f32[16,32], index: 4, kind: output, shape index: {}]  }
   0x1   :  { %v28_v0 = vld [vmem:[%s456_s2 + $0x38] sm:$0xff]  ;;  %v27_v1 = vld [vmem:[%s456_s2 + $0x30] sm:$0xff]  ;;  %v26_v2 = vld [vmem:[%s456_s2 + $0x28] sm:$0xff] }
   0x2   :  { %283 = vmatprep.subr.mxu0 %v28_v0  ;;  %v387_v3 = vld [vmem:[%s455_s1] sm:$0xff] }
   0x3   :  { %284 = vmatpush3.msra.mxu0 %v28_v0  ;;  %299 = vmatprep.mubr.msk.f32.mxu0 %vm34_vm0, %v387_v3 }
   0x4   :  { %285 = vmatprep.subr.mxu0 %v27_v1 }
   0x5   :  { %10 = vsyncpa [#allocation4], 0  ;;  %286 = vmatpush3.msra.mxu0 %v27_v1  ;;  %v25_v4 = vld [vmem:[%s456_s2 + $0x20] sm:$0xff]  ;;  %v24_v5 = vld [vmem:[%s456_s2 + $0x18] sm:$0xff]  ;;  %vm140_vm1 = vcmask 261120   ;;  %v138_v24 = vmul.f32 %v387_v3, %v387_v3  ;;  %v200_v1 = vstv %s454_s0  ;;  %s347_s16 = smov [#allocation3]  }
   0x6   :  { %287 = vmatprep.subr.mxu0 %v26_v2  ;;  %v23_v6 = vld [vmem:[%s456_s2 + $0x10] sm:$0xff]  ;;  %v22_v7 = vld [vmem:[%s456_s2 + $0x8] sm:$0xff]  ;;  %v21_v8 = vld [vmem:[%s456_s2] sm:$0xff]  ;;  %s345_s2 = smov 64   ;;  %s257_s17 = sshll.u32 %s347_s16, 4  ;;  %s258_s17 = int_to_ptr.vmem [resolvable:$true] %s257_s17 }
   0x7   :  { %288 = vmatpush3.msra.mxu0 %v26_v2  ;;  %v409_v9 = vld [vmem:[%s455_s1 + $0x8] sm:$0xff]  ;;  %v268_v11 = vld [vmem:[%s457_s3] ss:$0 sm:$0xff]  ;;  %s346_s1 = smov 96   ;;  %v141_v29 = vsel %vm140_vm1, %v138_v24, 0.0  ;;  %s323_s18 = scalar_lea.vmem %s258_s17, 256 }
   0x8   :  { %289 = vmatprep.subr.mxu0 %v25_v4  ;;  %v139_v30 = vmul.f32 %v409_v9, %v409_v9  ;;  %p324_p0 = scmp.ne.s32.totalorder %s258_s17, %s323_s18  ;;  %p328_p1 = scmp.lt.s32.totalorder %s258_s17, %s258_s17 }
   0x9   :  { %290 = vmatpush3.msra.mxu0 %v25_v4  ;;  %p329_p2 = scmp.lt.s32.totalorder %s323_s18, %s323_s18 }
   0xa   :  { %291 = vmatprep.subr.mxu0 %v24_v5  ;;  %v144_v32 = vsel %vm140_vm1, %v139_v30, 0.0 }
   0xb   :  { %292 = vmatpush3.msra.mxu0 %v24_v5  ;;  %p330_p3 = por %p329_p2, %p328_p1 }
   0xc   :  { %293 = vmatprep.subr.mxu0 %v23_v6 }
   0xd   :  { %294 = vmatpush3.msra.mxu0 %v23_v6  ;;  %p331_p4 = pnand %p330_p3, %p324_p0 }
   0xe   :  { %295 = vmatprep.subr.mxu0 %v22_v7 }
   0xf   :  { %296 = vmatpush3.msra.mxu0 %v22_v7 }
  0x10   :  { %297 = vmatprep.subr.mxu0 %v21_v8 }
  0x11   :  { %298 = vmatpush3.msra.mxu0 %v21_v8 }
  0x12   :  { %300 = vmatmul.mubr.msk.f32.vlgmr.msra.gmra.mxu0 %vm34_vm0, %v409_v9 }
  0xd2   :  { %v301_v10 = vpop.f32.mrf.mxu0 }
  0xd3   :  { %v113_v14 = vadd.f32 %v301_v10, %v268_v11 }
  0xd4   :  { %v107_v12 = vpop.f32.mrf.mxu0 }
  0xd5   :  { %v108_v13 = vadd.f32 %v268_v11, %v107_v12  ;;  %v117_v18 = vmax.f32 %v113_v14, 0.0 }
  0xd7   :  { %120 = vrot.lane.b32.xlu0 %v108_v13, %s345_s2  ;;  %v116_v15 = vmax.f32 %v108_v13, 0.0 }
  0xdb   :  { %122 = vrot.lane.b32.xlu0 %v113_v14, %s345_s2 }
 0x149   :  { %v121_v16 = vpop.permute.xlu0 %120 }
 0x14a   :  { %v126_v17 = vmul.f32 %v121_v16, %v116_v15 }
 0x14c   :  { %130 = vrot.lane.b32.xlu1 %v126_v17, %s346_s1 }
 0x14d   :  { %v123_v19 = vpop.permute.xlu0 %122 }
 0x14e   :  { %v127_v20 = vmul.f32 %v123_v19, %v117_v18 }
 0x150   :  { %132 = vrot.lane.b32.xlu1 %v127_v20, %s346_s1 }
 0x1be   :  { %v131_v21 = vpop.permute.xlu1 %130 }
 0x1bf   :  { %v416_v22 = vadd.f32 %v131_v21, %v126_v17 }
 0x1c1   :  { %v161_v23 = vmul.f32 %v416_v22, %v416_v22 }
 0x1c2   :  { %v133_v25 = vpop.permute.xlu1 %132 }
 0x1c3   :  { %v422_v26 = vadd.f32 %v133_v25, %v127_v20  ;;  %v163_v27 = vsel %vm140_vm1, %v161_v23, 0.0 }
 0x1c4   :  { %164 = vadd.xlane.f32.xlu0 %v163_v27 }
 0x1c5   :  { %v162_v28 = vmul.f32 %v422_v26, %v422_v26 }
 0x1c7   :  { %v166_v31 = vsel %vm140_vm1, %v162_v28, 0.0 }
 0x1c8   :  { %167 = vadd.xlane.f32.xlu1 %v166_v31  ;;  %142 = vadd.xlane.f32.xlu0 %v141_v29 }
 0x1cc   :  { %145 = vadd.xlane.f32.xlu0 %v144_v32 }
 0x24d   :  { %v165_v33 = vpop.xlane.xlu0 %164 }
 0x24e   :  { %307 = vrsqrt.f32 %v165_v33  ;;  %vm171_vm2 = vcmp.eq.f32.partialorder %v165_v33, inf  ;;  %v174_v38 = vand.u32 2147483648, %v165_v33  ;;  %vm173_vm3 = vcmp.eq.f32.partialorder %v165_v33, 0.0 }
 0x251   :  { %v168_v34 = vpop.xlane.xlu1 %167  ;;  %v143_v35 = vpop.xlane.xlu0 %142 }
 0x252   :  { %309 = vrsqrt.f32 %v168_v34  ;;  %vm178_vm5 = vcmp.eq.f32.partialorder %v168_v34, inf  ;;  %v181_v45 = vand.u32 2147483648, %v168_v34  ;;  %vm180_vm6 = vcmp.eq.f32.partialorder %v168_v34, 0.0 }
 0x253   :  { %311 = vrsqrt.f32 %v143_v35  ;;  %vm149_vm8 = vcmp.eq.f32.partialorder %v143_v35, inf  ;;  %v152_v56 = vand.u32 2147483648, %v143_v35  ;;  %vm151_vm9 = vcmp.eq.f32.partialorder %v143_v35, 0.0 }
 0x255   :  { %v146_v43 = vpop.xlane.xlu0 %145 }
 0x256   :  { %313 = vrsqrt.f32 %v146_v43  ;;  %vm156_vm10 = vcmp.eq.f32.partialorder %v146_v43, inf  ;;  %v159_v63 = vand.u32 2147483648, %v146_v43  ;;  %vm158_vm11 = vcmp.eq.f32.partialorder %v146_v43, 0.0 }
 0x25b   :  { %v308_v36 = vpop.eup %307 }
 0x25c   :  { %v170_v37 = vmul.f32 %v308_v36, %v165_v33 }
 0x25e   :  { %v172_v39 = vsel %vm171_vm2, %v165_v33, %v170_v37  ;;  %v272_v37 = vld [vmem:[%s457_s3 + $0x2] ss:$0 sm:$0xff] }
 0x25f   :  { %v310_v40 = vpop.eup %309  ;;  %v175_v41 = vsel %vm173_vm3, %v174_v38, %v172_v39 }
 0x260   :  { %vm183_vm4 = vcmp.eq.f32.partialorder %v175_v41, 0.0  ;;  %v177_v42 = vmul.f32 %v310_v40, %v168_v34  ;;  %v312_v51 = vpop.eup %311 }
 0x261   :  { %v185_v44 = vsel %vm183_vm4, 1.0, %v175_v41  ;;  %v148_v53 = vmul.f32 %v312_v51, %v143_v35 }
 0x262   :  { %v187_v46 = vadd.f32 1e-06, %v185_v44  ;;  %v179_v47 = vsel %vm178_vm5, %v168_v34, %v177_v42 }
 0x263   :  { %v182_v48 = vsel %vm180_vm6, %v181_v45, %v179_v47  ;;  %v314_v52 = vpop.eup %313  ;;  %v150_v57 = vsel %vm149_vm8, %v143_v35, %v148_v53  ;;  %v271_v35 = vld [vmem:[%s457_s3 + $0x1] ss:$0 sm:$0xff] }
 0x264   :  { %315 = vrcp.f32 %v187_v46  ;;  %vm184_vm7 = vcmp.eq.f32.partialorder %v182_v48, 0.0  ;;  %v155_v58 = vmul.f32 %v314_v52, %v146_v43  ;;  %v153_v0 = vsel %vm151_vm9, %v152_v56, %v150_v57 }
 0x265   :  { %v186_v49 = vsel %vm184_vm7, 1.0, %v182_v48 }
 0x266   :  { %v188_v50 = vadd.f32 1e-06, %v186_v49  ;;  %v157_v2 = vsel %vm156_vm10, %v146_v43, %v155_v58 }
 0x267   :  { %v160_v8 = vsel %vm158_vm11, %v159_v63, %v157_v2 }
 0x268   :  { %317 = vrcp.f32 %v188_v50 }
 0x271   :  { %v316_v54 = vpop.eup %315 }
 0x272   :  { %v191_v55 = vmul.f32 %v316_v54, %v187_v46 }
 0x274   :  { %v193_v59 = vsub.f32 2.0, %v191_v55 }
 0x275   :  { %v318_v60 = vpop.eup %317 }
 0x276   :  { %v195_v61 = vmul.f32 %v316_v54, %v193_v59  ;;  %v192_v62 = vmul.f32 %v318_v60, %v188_v50 }
 0x278   :  { %v197_v4 = vmul.f32 %v195_v61, %v153_v0  ;;  %v194_v5 = vsub.f32 2.0, %v192_v62 }
 0x27a   :  { %v201_v6 = vmul.f32 %v200_v1, %v197_v4  ;;  %v196_v7 = vmul.f32 %v318_v60, %v194_v5 }
 0x27c   :  { %v203_v10 = vmin.f32 %v201_v6, 1.0  ;;  %v198_v11 = vmul.f32 %v196_v7, %v160_v8 }
 0x27e   :  { %v205_v12 = vmul.f32 %v203_v10, %v416_v22  ;;  %v202_v13 = vmul.f32 %v200_v1, %v198_v11 }
 0x280   :  { %v207_v14 = vadd.f32 %v205_v12, %v387_v3  ;;  %v204_v15 = vmin.f32 %v202_v13, 1.0 }
 0x282   :  { %v209_v16 = vsel %vm140_vm1, %v207_v14, 0.0  ;;  %v206_v17 = vmul.f32 %v204_v15, %v422_v26 }
 0x283   :  { %210 = vadd.xlane.f32.xlu1 %v209_v16 }
 0x284   :  { %v208_v18 = vadd.f32 %v206_v17, %v409_v9 }
 0x286   :  { %v212_v19 = vsel %vm140_vm1, %v208_v18, 0.0 }
 0x287   :  { %213 = vadd.xlane.f32.xlu0 %v212_v19 }
 0x30c   :  { %v211_v20 = vpop.xlane.xlu1 %210 }
 0x30d   :  { %v216_v21 = vmul.f32 0.03125, %v211_v20 }
 0x30f   :  { %v218_v23 = vsub.f32 %v207_v14, %v216_v21 }
 0x310   :  { %v214_v24 = vpop.xlane.xlu0 %213 }
 0x311   :  { %v217_v25 = vmul.f32 0.03125, %v214_v24  ;;  %v220_v22 = vmul.f32 %v218_v23, %v218_v23 }
 0x313   :  { %v219_v27 = vsub.f32 %v208_v18, %v217_v25  ;;  %v222_v3 = vsel %vm140_vm1, %v220_v22, 0.0 }
 0x314   :  { %223 = vadd.xlane.f32.xlu1 %v222_v3 }
 0x315   :  { %v221_v28 = vmul.f32 %v219_v27, %v219_v27 }
 0x317   :  { %v225_v29 = vsel %vm140_vm1, %v221_v28, 0.0 }
 0x318   :  { %226 = vadd.xlane.f32.xlu0 %v225_v29 }
 0x39d   :  { %v224_v26 = vpop.xlane.xlu1 %223 }
 0x39e   :  { %v228_v30 = vmul.f32 0.03125, %v224_v26 }
 0x3a0   :  { %v232_v9 = vadd.f32 1e-05, %v228_v30 }
 0x3a1   :  { %v227_v31 = vpop.xlane.xlu0 %226 }
 0x3a2   :  { %319 = vrsqrt.f32 %v232_v9  ;;  %v229_v32 = vmul.f32 0.03125, %v227_v31 }
 0x3a4   :  { %v233_v33 = vadd.f32 1e-05, %v229_v32 }
 0x3a6   :  { %321 = vrsqrt.f32 %v233_v33 }
 0x3af   :  { %v320_v34 = vpop.eup %319 }
 0x3b0   :  { %v236_v36 = vmul.f32 %v320_v34, %v218_v23 }
 0x3b2   :  { %v242_v38 = vmul.f32 %v271_v35, %v236_v36 }
 0x3b3   :  { %v322_v39 = vpop.eup %321 }
 0x3b4   :  { %v237_v40 = vmul.f32 %v322_v39, %v219_v27  ;;  %v248_v41 = vadd.f32 %v272_v37, %v242_v38 }
 0x3b6   :  { %v243_v42 = vmul.f32 %v271_v35, %v237_v40  ;;  %250 = vst.msk [vmem:[#allocation3] sm:$0xff] %vm140_vm1, %v248_v41 }
 0x3b8   :  { %v249_v43 = vadd.f32 %v272_v37, %v243_v42 }
 0x3ba   :  { %251 = vst.msk [vmem:[#allocation3 + $0x8] sm:$0xff] %vm140_vm1, %v249_v43 }
 0x3bb   :  { %334 = shalt.err (!%p331_p4)
}
 0x3bc   :  { %s348_s3 = smov 128   ;;  %s349_s19 = smov 8  }
 0x3bd   :  { %263 = dma.vmem_to_hbm [thread:$0]  %s258_s17, 256, %s458_s4, [#allocation4], %s348_s3, %s348_s3, %s349_s19  }
 0x3be   :  { %343 = dma.done.wait [#allocation4], 256  }
 0x3bf   :  { %344 = vsyncadd [#allocation4], 4294967040 }
 0x3c0   :  { %267 = vsyncpa [#allocation4], 1 }

</bundles_post_ra>
